<compile_context>
chip_gen: v6e
topology: v6e:2x2x1
jax: 0.10.0
libtpu: 0.0.40
codegen_flags: <defaults>
</compile_context>

<pallas_src>
import jax
import jax.numpy as jnp
from jax.experimental import pallas as pl
from jax.experimental.pallas import tpu as pltpu


def _round_up(n, m):
    return ((n + m - 1) // m) * m


def _mlp_kernel(x_ref, t_ref, w1x_ref, w1t_ref, b1_ref,
                w2_ref, b2_ref, w3_ref, b3_ref, o_ref):
    # fc1 split over the (x | t) input halves (replaces the concat) + bias + ReLU.
    h = jnp.dot(x_ref[...], w1x_ref[...], preferred_element_type=jnp.float32)
    h = h + jnp.dot(t_ref[...], w1t_ref[...], preferred_element_type=jnp.float32)
    h = jnp.maximum(h + b1_ref[...], 0.0)
    # fc2 + bias + ReLU.
    h = jnp.maximum(
        jnp.dot(h, w2_ref[...], preferred_element_type=jnp.float32) + b2_ref[...],
        0.0)
    # fc3 + bias (output axis is zero-padded to a 128-multiple -> lane-dense vst).
    o_ref[...] = (jnp.dot(h, w3_ref[...], preferred_element_type=jnp.float32)
                  + b3_ref[...]).astype(o_ref.dtype)


def prepare_params(params, dx, dt):
    """One-time parameter prep (hoisted out of the forward hot path):
       - transpose PyTorch-layout (out, in) weights to (in, out),
       - split fc1 along its input axis into the x / t halves,
       - zero-pad the fc3 output axis (and bias) to a multiple of 128 lanes."""
    w1, b1, w2, b2, w3, b3 = params
    hidden = w1.shape[0]
    dout = w3.shape[0]
    dout_pad = _round_up(dout, 128)

    w1x = jnp.asarray(w1[:, :dx].T, jnp.float32)            # (dx, H)
    w1t = jnp.asarray(w1[:, dx:dx + dt].T, jnp.float32)     # (dt, H)
    b1r = jnp.asarray(b1, jnp.float32)[None, :]              # (1, H)
    w2t = jnp.asarray(w2.T, jnp.float32)                     # (H, H)
    b2r = jnp.asarray(b2, jnp.float32)[None, :]              # (1, H)
    w3t = jnp.zeros((hidden, dout_pad), jnp.float32)
    w3t = w3t.at[:, :dout].set(jnp.asarray(w3.T, jnp.float32))   # (H, Dout_pad)
    b3r = jnp.zeros((1, dout_pad), jnp.float32)
    b3r = b3r.at[:, :dout].set(jnp.asarray(b3, jnp.float32))     # (1, Dout_pad)

    return dict(w1x=w1x, w1t=w1t, b1=b1r, w2=w2t, b2=b2r, w3=w3t, b3=b3r,
                hidden=hidden, dout=dout, dout_pad=dout_pad)


def mlp_forward(x, t, p, *, tb=256):
    """x: [B, Dx], t: [B, Dt]. p: output of prepare_params. Returns [B, Dout]."""
    B, Dx = x.shape
    Dt = t.shape[1]
    H = p["hidden"]
    Dout = p["dout"]
    Dout_pad = p["dout_pad"]

    # Batch tile: multiple of 8 (f32 sublane), no larger than the (padded) batch.
    tb = min(tb, _round_up(B, 8))
    B_pad = _round_up(B, tb)
    if B_pad != B:
        x = jnp.pad(x, ((0, B_pad - B), (0, 0)))
        t = jnp.pad(t, ((0, B_pad - B), (0, 0)))

    out = pl.pallas_call(
        _mlp_kernel,
        out_shape=jax.ShapeDtypeStruct((B_pad, Dout_pad), jnp.float32),
        grid=(B_pad // tb,),
        in_specs=[
            # Batch-tiled activations (pipelined over the grid).
            pl.BlockSpec((tb, Dx), lambda i: (i, 0)),
            pl.BlockSpec((tb, Dt), lambda i: (i, 0)),
            # Weights / biases: resident in VMEM across all grid steps.
            pl.BlockSpec((Dx, H), lambda i: (0, 0)),
            pl.BlockSpec((Dt, H), lambda i: (0, 0)),
            pl.BlockSpec((1, H), lambda i: (0, 0)),
            pl.BlockSpec((H, H), lambda i: (0, 0)),
            pl.BlockSpec((1, H), lambda i: (0, 0)),
            pl.BlockSpec((H, Dout_pad), lambda i: (0, 0)),
            pl.BlockSpec((1, Dout_pad), lambda i: (0, 0)),
        ],
        out_specs=pl.BlockSpec((tb, Dout_pad), lambda i: (i, 0)),
        compiler_params=pltpu.CompilerParams(
            dimension_semantics=("parallel",)),
    )(x, t, p["w1x"], p["w1t"], p["b1"], p["w2"], p["b2"], p["w3"], p["b3"])

    return out[:B, :Dout]


def init_params(key, input_dim, hidden_dim, output_dim):
    """PyTorch-Linear-shaped parameters: W is (out, in), b is (out,)."""
    ks = jax.random.split(key, 6)

    def lin(kw, kb, fan_in, fan_out):
        bound = 1.0 / jnp.sqrt(fan_in)
        w = jax.random.uniform(kw, (fan_out, fan_in), jnp.float32, -bound, bound)
        b = jax.random.uniform(kb, (fan_out,), jnp.float32, -bound, bound)
        return w, b

    w1, b1 = lin(ks[0], ks[1], input_dim, hidden_dim)
    w2, b2 = lin(ks[2], ks[3], hidden_dim, hidden_dim)
    w3, b3 = lin(ks[4], ks[5], hidden_dim, output_dim)
    return (w1, b1, w2, b2, w3, b3)


if __name__ == "__main__":
    # Shapes consistent with the module: hidden_dim=256 (spec),
    # input_dim = Dx + Dt, output_dim = input_dim.  Lane-dense feature dims.
    B, Dx, Dt = 512, 96, 32
    input_dim = Dx + Dt          # 128
    hidden_dim = 256
    output_dim = input_dim       # 128

    key = jax.random.PRNGKey(0)
    kx, kt, kp = jax.random.split(key, 3)
    x = jax.random.normal(kx, (B, Dx), jnp.float32)
    t = jax.random.normal(kt, (B, Dt), jnp.float32)

    params = init_params(kp, input_dim, hidden_dim, output_dim)
    prepped = prepare_params(params, Dx, Dt)     # one-time weight prep (not in hot path)

    out = mlp_forward(x, t, prepped, tb=128)
    jax.block_until_ready(out)

    # Pure-JAX reference (same math as the PyTorch forward), f32 matmuls.
    w1, b1, w2, b2, w3, b3 = params
    hp = jax.lax.Precision.HIGHEST
    xc = jnp.concatenate([x, t], axis=-1)
    h = jnp.maximum(jnp.dot(xc, w1.T, precision=hp) + b1, 0.0)
    h = jnp.maximum(jnp.dot(h, w2.T, precision=hp) + b2, 0.0)
    ref = jnp.dot(h, w3.T, precision=hp) + b3

    assert out.shape == (B, output_dim)
    assert jnp.allclose(out, ref, atol=1e-4, rtol=1e-4), float(
        jnp.max(jnp.abs(out - ref)))

    print("KERNEL_OK")
</pallas_src>

<mosaic_0001>
module attributes {stable_mosaic.version = 11 : i64} {
  func.func @_mlp_kernel(%arg0: i32, %arg1: memref<128x96xf32, #tpu.memory_space<vmem>>, %arg2: memref<128x32xf32, #tpu.memory_space<vmem>>, %arg3: memref<96x256xf32, #tpu.memory_space<vmem>>, %arg4: memref<32x256xf32, #tpu.memory_space<vmem>>, %arg5: memref<1x256xf32, #tpu.memory_space<vmem>>, %arg6: memref<256x256xf32, #tpu.memory_space<vmem>>, %arg7: memref<1x256xf32, #tpu.memory_space<vmem>>, %arg8: memref<256x128xf32, #tpu.memory_space<vmem>>, %arg9: memref<1x128xf32, #tpu.memory_space<vmem>>, %arg10: memref<128x128xf32, #tpu.memory_space<vmem>>) attributes {dimension_semantics = [#tpu.dimension_semantics<parallel>], iteration_bounds = array<i64: 4>, scalar_prefetch = 0 : i64, scratch_operands = 0 : i64, tpu.core_type = #tpu.core_type<tc>, window_params = [{transform_indices = @transform_0, window_bounds = array<i64: 128, 96>}, {transform_indices = @transform_1, window_bounds = array<i64: 128, 32>}, {pipeline_mode = #tpu.pipeline_mode<synchronous>, transform_indices = @transform_2, window_bounds = array<i64: 96, 256>}, {pipeline_mode = #tpu.pipeline_mode<synchronous>, transform_indices = @transform_3, window_bounds = array<i64: 32, 256>}, {pipeline_mode = #tpu.pipeline_mode<synchronous>, transform_indices = @transform_4, window_bounds = array<i64: 1, 256>}, {pipeline_mode = #tpu.pipeline_mode<synchronous>, transform_indices = @transform_5, window_bounds = array<i64: 256, 256>}, {pipeline_mode = #tpu.pipeline_mode<synchronous>, transform_indices = @transform_6, window_bounds = array<i64: 1, 256>}, {pipeline_mode = #tpu.pipeline_mode<synchronous>, transform_indices = @transform_7, window_bounds = array<i64: 256, 128>}, {pipeline_mode = #tpu.pipeline_mode<synchronous>, transform_indices = @transform_8, window_bounds = array<i64: 1, 128>}, {transform_indices = @transform_9, window_bounds = array<i64: 128, 128>}]} {
    %c0 = arith.constant 0 : index
    %c0_0 = arith.constant 0 : index
    %0 = vector.load %arg1[%c0, %c0_0] : memref<128x96xf32, #tpu.memory_space<vmem>>, vector<128x96xf32>
    %c0_1 = arith.constant 0 : index
    %c0_2 = arith.constant 0 : index
    %1 = vector.load %arg3[%c0_1, %c0_2] : memref<96x256xf32, #tpu.memory_space<vmem>>, vector<96x256xf32>
    %cst = arith.constant dense<0.000000e+00> : vector<128x256xf32>
    %2 = tpu.matmul %0, %1, %cst {dimension_numbers = #tpu.dot_dimension_numbers<[1], [0], [0], [1], [0, 0, 1, 1], [], []>} : vector<128x96xf32>, vector<96x256xf32>, vector<128x256xf32> -> vector<128x256xf32>
    %c0_3 = arith.constant 0 : index
    %c0_4 = arith.constant 0 : index
    %3 = vector.load %arg2[%c0_3, %c0_4] : memref<128x32xf32, #tpu.memory_space<vmem>>, vector<128x32xf32>
    %c0_5 = arith.constant 0 : index
    %c0_6 = arith.constant 0 : index
    %4 = vector.load %arg4[%c0_5, %c0_6] : memref<32x256xf32, #tpu.memory_space<vmem>>, vector<32x256xf32>
    %cst_7 = arith.constant dense<0.000000e+00> : vector<128x256xf32>
    %5 = tpu.matmul %3, %4, %cst_7 {dimension_numbers = #tpu.dot_dimension_numbers<[1], [0], [0], [1], [0, 0, 1, 1], [], []>} : vector<128x32xf32>, vector<32x256xf32>, vector<128x256xf32> -> vector<128x256xf32>
    %6 = arith.addf %2, %5 : vector<128x256xf32>
    %c0_8 = arith.constant 0 : index
    %c0_9 = arith.constant 0 : index
    %7 = vector.load %arg5[%c0_8, %c0_9] : memref<1x256xf32, #tpu.memory_space<vmem>>, vector<1x256xf32>
    %8 = vector.broadcast %7 : vector<1x256xf32> to vector<128x256xf32>
    %9 = arith.addf %6, %8 : vector<128x256xf32>
    %cst_10 = arith.constant 0.000000e+00 : f32
    %10 = vector.broadcast %cst_10 : f32 to vector<128x256xf32>
    %11 = arith.maximumf %9, %10 : vector<128x256xf32>
    %c0_11 = arith.constant 0 : index
    %c0_12 = arith.constant 0 : index
    %12 = vector.load %arg6[%c0_11, %c0_12] : memref<256x256xf32, #tpu.memory_space<vmem>>, vector<256x256xf32>
    %cst_13 = arith.constant dense<0.000000e+00> : vector<128x256xf32>
    %13 = tpu.matmul %11, %12, %cst_13 {dimension_numbers = #tpu.dot_dimension_numbers<[1], [0], [0], [1], [0, 0, 1, 1], [], []>} : vector<128x256xf32>, vector<256x256xf32>, vector<128x256xf32> -> vector<128x256xf32>
    %c0_14 = arith.constant 0 : index
    %c0_15 = arith.constant 0 : index
    %14 = vector.load %arg7[%c0_14, %c0_15] : memref<1x256xf32, #tpu.memory_space<vmem>>, vector<1x256xf32>
    %15 = vector.broadcast %14 : vector<1x256xf32> to vector<128x256xf32>
    %16 = arith.addf %13, %15 : vector<128x256xf32>
    %cst_16 = arith.constant 0.000000e+00 : f32
    %17 = vector.broadcast %cst_16 : f32 to vector<128x256xf32>
    %18 = arith.maximumf %16, %17 : vector<128x256xf32>
    %c0_17 = arith.constant 0 : index
    %c0_18 = arith.constant 0 : index
    %19 = vector.load %arg8[%c0_17, %c0_18] : memref<256x128xf32, #tpu.memory_space<vmem>>, vector<256x128xf32>
    %cst_19 = arith.constant dense<0.000000e+00> : vector<128x128xf32>
    %20 = tpu.matmul %18, %19, %cst_19 {dimension_numbers = #tpu.dot_dimension_numbers<[1], [0], [0], [1], [0, 0, 1, 1], [], []>} : vector<128x256xf32>, vector<256x128xf32>, vector<128x128xf32> -> vector<128x128xf32>
    %c0_20 = arith.constant 0 : index
    %c0_21 = arith.constant 0 : index
    %21 = vector.load %arg9[%c0_20, %c0_21] : memref<1x128xf32, #tpu.memory_space<vmem>>, vector<1x128xf32>
    %22 = vector.broadcast %21 : vector<1x128xf32> to vector<128x128xf32>
    %23 = arith.addf %20, %22 : vector<128x128xf32>
    %c0_22 = arith.constant 0 : index
    %c0_23 = arith.constant 0 : index
    %24 = vector.load %arg10[%c0_22, %c0_23] : memref<128x128xf32, #tpu.memory_space<vmem>>, vector<128x128xf32>
    tpu.vector_store %arg10[%c0_22, %c0_23], %23 {strides = array<i32>} : memref<128x128xf32, #tpu.memory_space<vmem>>, vector<128x128xf32>,
    return
  }
  func.func @transform_0(%arg0: i32) -> (i32, i32) {
    %c0_i32 = arith.constant 0 : i32
    %c0_i32_0 = arith.constant 0 : i32
    return %arg0, %c0_i32 : i32, i32
  }
  func.func @transform_1(%arg0: i32) -> (i32, i32) {
    %c0_i32 = arith.constant 0 : i32
    %c0_i32_0 = arith.constant 0 : i32
    return %arg0, %c0_i32 : i32, i32
  }
  func.func @transform_2(%arg0: i32) -> (i32, i32) {
    %c0_i32 = arith.constant 0 : i32
    %c0_i32_0 = arith.constant 0 : i32
    %c0_i32_1 = arith.constant 0 : i32
    return %c0_i32, %c0_i32_0 : i32, i32
  }
  func.func @transform_3(%arg0: i32) -> (i32, i32) {
    %c0_i32 = arith.constant 0 : i32
    %c0_i32_0 = arith.constant 0 : i32
    %c0_i32_1 = arith.constant 0 : i32
    return %c0_i32, %c0_i32_0 : i32, i32
  }
  func.func @transform_4(%arg0: i32) -> (i32, i32) {
    %c0_i32 = arith.constant 0 : i32
    %c0_i32_0 = arith.constant 0 : i32
    %c0_i32_1 = arith.constant 0 : i32
    return %c0_i32, %c0_i32_0 : i32, i32
  }
  func.func @transform_5(%arg0: i32) -> (i32, i32) {
    %c0_i32 = arith.constant 0 : i32
    %c0_i32_0 = arith.constant 0 : i32
    %c0_i32_1 = arith.constant 0 : i32
    return %c0_i32, %c0_i32_0 : i32, i32
  }
  func.func @transform_6(%arg0: i32) -> (i32, i32) {
    %c0_i32 = arith.constant 0 : i32
    %c0_i32_0 = arith.constant 0 : i32
    %c0_i32_1 = arith.constant 0 : i32
    return %c0_i32, %c0_i32_0 : i32, i32
  }
  func.func @transform_7(%arg0: i32) -> (i32, i32) {
    %c0_i32 = arith.constant 0 : i32
    %c0_i32_0 = arith.constant 0 : i32
    %c0_i32_1 = arith.constant 0 : i32
    return %c0_i32, %c0_i32_0 : i32, i32
  }
  func.func @transform_8(%arg0: i32) -> (i32, i32) {
    %c0_i32 = arith.constant 0 : i32
    %c0_i32_0 = arith.constant 0 : i32
    %c0_i32_1 = arith.constant 0 : i32
    return %c0_i32, %c0_i32_0 : i32, i32
  }
  func.func @transform_9(%arg0: i32) -> (i32, i32) {
    %c0_i32 = arith.constant 0 : i32
    %c0_i32_0 = arith.constant 0 : i32
    return %arg0, %c0_i32 : i32, i32
  }
}

</mosaic_0001>

<bundles_post_ra>
// kernel: tpu_custom_call.1
= control target key start
LH: loop header
LB: loop body
LE: loop exit
PB: predicated region body
PF: predicated region fallthrough
CT: control target
= control target key end

     0   :  { %14 = vsyncpa [#allocation3], 0  ;;  %s2616_s0 = inlined_call_operand.vmem [shape: f32[512,96], index: 0, kind: input, shape index: {}]   ;;  %s2617_s1 = inlined_call_operand.vmem [shape: f32[512,32], index: 1, kind: input, shape index: {}]   ;;  %s2618_s2 = inlined_call_operand.vmem [shape: f32[96,256], index: 2, kind: input, shape index: {}]   ;;  %s2619_s3 = inlined_call_operand.vmem [shape: f32[32,256], index: 3, kind: input, shape index: {}]   ;;  %s2620_s4 = inlined_call_operand.vmem [shape: f32[1,256], index: 4, kind: input, shape index: {}]   ;;  %s2621_s5 = inlined_call_operand.vmem [shape: f32[256,256], index: 5, kind: input, shape index: {}]   ;;  %s2622_s6 = inlined_call_operand.vmem [shape: f32[1,256], index: 6, kind: input, shape index: {}]   ;;  %s2623_s7 = inlined_call_operand.vmem [shape: f32[256,128], index: 7, kind: input, shape index: {}]   ;;  %s2624_s8 = inlined_call_operand.vmem [shape: f32[1,128], index: 8, kind: input, shape index: {}]   ;;  %s2625_s9 = inlined_call_operand.hbm [shape: f32[512,128], index: 9, kind: output, shape index: {}]  }
   0x1   :  { %16 = vsyncpa [#allocation3 + $0x1], 0  ;;  %s1791_s30 = smov 0   ;;  %s1793_s10 = smov 0  }
   0x2   :  { %s1795_s11 = smov 0   ;;  %s1797_s12 = smov 0  }
   0x3 LB: > { %s1812_s13 = sadd.s32 4294967295, %s1735_s12   ;;  %s1473_s14 = sadd.s32 4294967294, %s1735_s12   ;;  %s1735_s12 = sphi %s1797_s12, %s2633_s12   ;;  %s1731_s11 = sphi %s1795_s11, %s2632_s11   ;;  %s1727_s10 = sphi %s1793_s10, %s2631_s10   ;;  %s1723_s30 = sphi %s1791_s30, %s2630_s30  }
   0x4   : > { %s1816_s15 = sadd.s32 1, %s1735_s12   ;;  %s228_s16 = sadd.s32 1, %s1731_s11 }
   0x5   : > { %s225_s17 = ssub.s32 %s1735_s12, %s1816_s15  ;;  %p238_p0 = scmp.ne.s32.totalorder %s1731_s11, %s1727_s10 }
   0x6   : > { %p226_p1 = scmp.eq.s32.totalorder %s225_s17, 0  ;;  %p239_p2 = scmp.eq.s32.totalorder %s1812_s13, 3 }
   0x7   : > { %p244_p3 = scmp.ne.s32.totalorder %s1727_s10, %s1723_s30  ;;  %p245_p4 = scmp.eq.s32.totalorder %s1473_s14, 3 }
   0x8   : > { %s1827_s18 = scalar_select %p226_p1, %s1731_s11, %s228_s16  }
   0x9   : > { %p1829_p5 = por %p239_p2, %p238_p0  ;;  %p1833_p6 = por %p245_p4, %p244_p3 }
   0xa   : > { %p1476_p7 = scmp.ge.s32.totalorder %s1735_s12, 1  ;;  %p302_p8 = scmp.lt.s32.totalorder %s1735_s12, 5 }
   0xc   : > { %p303_p9 = pnand %p1476_p7, %p302_p8 }
   0xd   : > { %s1478_s27 = sshll.u32 (!%p303_p9), %s1812_s13, 4  ;;  %s340_s24 = sand.u32 (!%p303_p9), 1, %s1727_s10  }
   0xe   : > { %306 = sbr.rel (%p303_p9) target bundleno = 719 (0x2cf), region = 56  ;;  %p344_p10 = scmp.lt.s32.totalorder (!%p303_p9), %s1478_s27, 63 }
   0xf   : > { %s1477_s25 = sshll.u32 (!%p303_p9), %s340_s24, 7  ;;  %s2576_s21 = scalar_lea.sflag (!%p303_p9), [#allocation3], %s340_s24 }
  0x13   : > { %v395_v0 = vld [vmem:[%s2618_s2 + $0xb8] sm:$0xff]  ;;  %v394_v1 = vld [vmem:[%s2618_s2 + $0xb0] sm:$0xff]  ;;  %v393_v2 = vld [vmem:[%s2618_s2 + $0xa8] sm:$0xff]  ;;  %v1737_v4 = vmov 0.0   ;;  %s2635_s27 = smov (!%p344_p10, %s1478_s27), 63  ;;  %vm420_vm0 = vcmask 261120  }
  0x14   : > { %687 = vmatprep.subr.mxu1 %v395_v0  ;;  %v392_v3 = vld [vmem:[%s2618_s2 + $0xa0] sm:$0xff]  ;;  %533 = vmatprep.mubr.f32.mxu0 %v1737_v4  ;;  %v391_v5 = vld [vmem:[%s2618_s2 + $0x98] sm:$0xff]  ;;  %v390_v6 = vld [vmem:[%s2618_s2 + $0x90] sm:$0xff]  ;;  %s2626_s16 = sshll.u32 %s2635_s27, 3  ;;  %s2629_s23 = sshll.u32 %s2635_s27, 3  ;;  %vm630_vm1 = vcmask 785408  }
  0x15   : > { %688 = vmatpush1.msra.mxu1 %v394_v1  ;;  %743 = vmatprep.mubr.f32.mxu1 %v1737_v4  ;;  %v389_v7 = vld [vmem:[%s2618_s2 + $0x88] sm:$0xff]  ;;  %v419_v8 = vld [vmem:[%s2619_s3 + $0x38] sm:$0xff]  ;;  %v388_v9 = vld [vmem:[%s2618_s2 + $0x80] sm:$0xff]  ;;  %s1895_s22 = scalar_lea.vmem %s2617_s1, %s2626_s16  ;;  %s1954_s26 = scalar_lea.vmem %s2616_s0, %s2629_s23 }
  0x16   : > { %689 = vmatprep.subr.mxu1 %v393_v2  ;;  %493 = vmatprep.subr.mxu0 %v419_v8  ;;  %v418_v10 = vld [vmem:[%s2619_s3 + $0x30] sm:$0xff]  ;;  %v387_v11 = vld [vmem:[%s2618_s2 + $0x78] sm:$0xff]  ;;  %v417_v12 = vld [vmem:[%s2619_s3 + $0x28] sm:$0xff]  ;;  %s1738_s23 = smov [#allocation2]  }
  0x17   : > { %690 = vmatpush1.msra.mxu1 %v392_v3  ;;  %494 = vmatpush1.msra.mxu0 %v418_v10  ;;  %v416_v13 = vld [vmem:[%s2619_s3 + $0x20] sm:$0xff]  ;;  %v386_v14 = vld [vmem:[%s2618_s2 + $0x70] sm:$0xff]  ;;  %v415_v15 = vld [vmem:[%s2619_s3 + $0x18] sm:$0xff] }
  0x18   : > { %691 = vmatprep.subr.mxu1 %v391_v5  ;;  %495 = vmatprep.subr.mxu0 %v417_v12  ;;  %v385_v16 = vld [vmem:[%s2618_s2 + $0x68] sm:$0xff]  ;;  %v414_v17 = vld [vmem:[%s2619_s3 + $0x10] sm:$0xff]  ;;  %v384_v19 = vld [vmem:[%s2618_s2 + $0x60] sm:$0xff] }
  0x19   : > { %692 = vmatpush1.msra.mxu1 %v390_v6  ;;  %496 = vmatpush1.msra.mxu0 %v416_v13  ;;  %v413_v18 = vld [vmem:[%s2619_s3 + $0x8] sm:$0xff]  ;;  %v412_v20 = vld [vmem:[%s2619_s3] sm:$0xff]  ;;  %v383_v21 = vld [vmem:[%s2618_s2 + $0x58] sm:$0xff] }
  0x1a   : > { %693 = vmatprep.subr.mxu1 %v389_v7  ;;  %497 = vmatprep.subr.mxu0 %v415_v15  ;;  %v396_v22 = vld [vmem:[%s1895_s22] sm:$0xff]  ;;  %v382_v23 = vld [vmem:[%s2618_s2 + $0x50] sm:$0xff]  ;;  %v381_v24 = vld [vmem:[%s2618_s2 + $0x48] sm:$0xff] }
  0x1b   : > { %694 = vmatpush1.msra.mxu1 %v388_v9  ;;  %498 = vmatpush1.msra.mxu0 %v414_v17  ;;  %v380_v25 = vld [vmem:[%s2618_s2 + $0x40] sm:$0xff]  ;;  %v379_v26 = vld [vmem:[%s2618_s2 + $0x38] sm:$0xff]  ;;  %v397_v27 = vld [vmem:[%s1895_s22 + $0x8] sm:$0xff] }
  0x1c   : > { %695 = vmatprep.subr.mxu1 %v387_v11  ;;  %499 = vmatprep.subr.mxu0 %v413_v18  ;;  %v378_v28 = vld [vmem:[%s2618_s2 + $0x30] sm:$0xff]  ;;  %v377_v29 = vld [vmem:[%s2618_s2 + $0x28] sm:$0xff]  ;;  %v376_v30 = vld [vmem:[%s2618_s2 + $0x20] sm:$0xff] }
  0x1d   : > { %696 = vmatpush1.msra.mxu1 %v386_v14  ;;  %500 = vmatpush1.msra.mxu0 %v412_v20  ;;  %v375_v31 = vld [vmem:[%s2618_s2 + $0x18] sm:$0xff]  ;;  %v398_v32 = vld [vmem:[%s1895_s22 + $0x10] sm:$0xff]  ;;  %v373_v34 = vld [vmem:[%s2618_s2 + $0x8] sm:$0xff] }
  0x1e   : > { %697 = vmatprep.subr.mxu1 %v385_v16  ;;  %1482 = vmatmul.mubr.msk.f32.vlgmr.msra.gmra.mxu0 %vm420_vm0, %v396_v22  ;;  %v374_v33 = vld [vmem:[%s2618_s2 + $0x10] sm:$0xff]  ;;  %v372_v35 = vld [vmem:[%s2618_s2] sm:$0xff]  ;;  %v947_v36 = vld [vmem:[%s2621_s5 + $0xf8] sm:$0xff] }
  0x1f   : > { %698 = vmatpush1.msra.mxu1 %v384_v19  ;;  %539 = vmatprep.mubr.f32.mxu0 %v1737_v4  ;;  %v946_v37 = vld [vmem:[%s2621_s5 + $0xf0] sm:$0xff]  ;;  %v356_v38 = vld [vmem:[%s1954_s26] sm:$0xff]  ;;  %v399_v39 = vld [vmem:[%s1895_s22 + $0x18] sm:$0xff] }
  0x20   : > { %699 = vmatprep.subr.mxu1 %v383_v21  ;;  %992 = vmatprep.subr.mxu0 %v947_v36  ;;  %v945_v40 = vld [vmem:[%s2621_s5 + $0xe8] sm:$0xff]  ;;  %v944_v41 = vld [vmem:[%s2621_s5 + $0xe0] sm:$0xff]  ;;  %v943_v44 = vld [vmem:[%s2621_s5 + $0xd8] sm:$0xff] }
  0x21   : > { %700 = vmatpush1.msra.mxu1 %v382_v23  ;;  %993 = vmatpush1.msra.mxu0 %v946_v37  ;;  %v357_v42 = vld [vmem:[%s1954_s26 + $0x8] sm:$0xff]  ;;  %v400_v43 = vld [vmem:[%s1895_s22 + $0x20] sm:$0xff]  ;;  %v942_v45 = vld [vmem:[%s2621_s5 + $0xd0] sm:$0xff] }
  0x22   : > { %701 = vmatprep.subr.mxu1 %v381_v24  ;;  %1483 = vmatmul.mubr.msk.f32.gmra.mxu0 %vm420_vm0, %v397_v27  ;;  %v358_v46 = vld [vmem:[%s1954_s26 + $0x10] sm:$0xff]  ;;  %v401_v47 = vld [vmem:[%s1895_s22 + $0x28] sm:$0xff]  ;;  %v940_v49 = vld [vmem:[%s2621_s5 + $0xc0] sm:$0xff] }
  0x23   : > { %702 = vmatpush1.msra.mxu1 %v380_v25  ;;  %545 = vmatprep.mubr.f32.mxu0 %v1737_v4  ;;  %v941_v48 = vld [vmem:[%s2621_s5 + $0xc8] sm:$0xff]  ;;  %v359_v50 = vld [vmem:[%s1954_s26 + $0x18] sm:$0xff]  ;;  %v402_v51 = vld [vmem:[%s1895_s22 + $0x30] sm:$0xff] }
  0x24   : > { %703 = vmatprep.subr.mxu1 %v379_v26  ;;  %994 = vmatprep.subr.mxu0 %v945_v40  ;;  %v939_v52 = vld [vmem:[%s2621_s5 + $0xb8] sm:$0xff]  ;;  %v938_v53 = vld [vmem:[%s2621_s5 + $0xb0] sm:$0xff]  ;;  %v360_v54 = vld [vmem:[%s1954_s26 + $0x20] sm:$0xff] }
  0x25   : > { %704 = vmatpush1.msra.mxu1 %v378_v28  ;;  %995 = vmatpush1.msra.mxu0 %v944_v41  ;;  %v403_v55 = vld [vmem:[%s1895_s22 + $0x38] sm:$0xff]  ;;  %v937_v56 = vld [vmem:[%s2621_s5 + $0xa8] sm:$0xff]  ;;  %v936_v57 = vld [vmem:[%s2621_s5 + $0xa0] sm:$0xff] }
  0x26   : > { %705 = vmatprep.subr.mxu1 %v377_v29  ;;  %1484 = vmatmul.mubr.msk.f32.gmra.mxu0 %vm420_vm0, %v398_v32  ;;  %v361_v58 = vld [vmem:[%s1954_s26 + $0x28] sm:$0xff]  ;;  %v404_v59 = vld [vmem:[%s1895_s22 + $0x40] sm:$0xff]  ;;  %v935_v60 = vld [vmem:[%s2621_s5 + $0x98] sm:$0xff] }
  0x27   : > { %706 = vmatpush1.msra.mxu1 %v376_v30  ;;  %551 = vmatprep.mubr.f32.mxu0 %v1737_v4  ;;  %v934_v61 = vld [vmem:[%s2621_s5 + $0x90] sm:$0xff]  ;;  %v405_v63 = vld [vmem:[%s1895_s22 + $0x48] sm:$0xff]  ;;  %v932_v1 = vld [vmem:[%s2621_s5 + $0x80] sm:$0xff] }
  0x28   : > { %707 = vmatprep.subr.mxu1 %v375_v31  ;;  %996 = vmatprep.subr.mxu0 %v943_v44  ;;  %v362_v62 = vld [vmem:[%s1954_s26 + $0x30] sm:$0xff]  ;;  %v933_v0 = vld [vmem:[%s2621_s5 + $0x88] sm:$0xff]  ;;  %v363_v2 = vld [vmem:[%s1954_s26 + $0x38] sm:$0xff] }
  0x29   : > { %708 = vmatpush1.msra.mxu1 %v374_v33  ;;  %997 = vmatpush1.msra.mxu0 %v942_v45  ;;  %v406_v3 = vld [vmem:[%s1895_s22 + $0x50] sm:$0xff]  ;;  %v931_v5 = vld [vmem:[%s2621_s5 + $0x78] sm:$0xff]  ;;  %v364_v7 = vld [vmem:[%s1954_s26 + $0x40] sm:$0xff] }
  0x2a   : > { %709 = vmatprep.subr.mxu1 %v373_v34  ;;  %1485 = vmatmul.mubr.msk.f32.gmra.mxu0 %vm420_vm0, %v399_v39  ;;  %v930_v6 = vld [vmem:[%s2621_s5 + $0x70] sm:$0xff]  ;;  %v407_v8 = vld [vmem:[%s1895_s22 + $0x58] sm:$0xff]  ;;  %v929_v9 = vld [vmem:[%s2621_s5 + $0x68] sm:$0xff] }
  0x2b   : > { %710 = vmatpush1.msra.mxu1 %v372_v35  ;;  %557 = vmatprep.mubr.f32.mxu0 %v1737_v4  ;;  %v928_v10 = vld [vmem:[%s2621_s5 + $0x60] sm:$0xff]  ;;  %v365_v11 = vld [vmem:[%s1954_s26 + $0x48] sm:$0xff]  ;;  %v927_v13 = vld [vmem:[%s2621_s5 + $0x58] sm:$0xff] }
  0x2c   : > { %1498 = vmatmul.mubr.msk.f32.vlgmr.msra.gmra.mxu1 %vm630_vm1, %v356_v38  ;;  %998 = vmatprep.subr.mxu0 %v941_v48  ;;  %v408_v12 = vld [vmem:[%s1895_s22 + $0x60] sm:$0xff]  ;;  %v926_v14 = vld [vmem:[%s2621_s5 + $0x50] sm:$0xff]  ;;  %v409_v16 = vld [vmem:[%s1895_s22 + $0x68] sm:$0xff] }
  0x2d   : > { %749 = vmatprep.mubr.f32.mxu1 %v1737_v4  ;;  %999 = vmatpush1.msra.mxu0 %v940_v49  ;;  %v366_v15 = vld [vmem:[%s1954_s26 + $0x50] sm:$0xff]  ;;  %v925_v17 = vld [vmem:[%s2621_s5 + $0x48] sm:$0xff]  ;;  %v924_v18 = vld [vmem:[%s2621_s5 + $0x40] sm:$0xff] }
  0x2e   : > { %1486 = vmatmul.mubr.msk.f32.gmra.mxu0 %vm420_vm0, %v400_v43  ;;  %1000 = vmatprep.subr.mxu0 %v939_v52  ;;  %v367_v19 = vld [vmem:[%s1954_s26 + $0x58] sm:$0xff]  ;;  %v410_v20 = vld [vmem:[%s1895_s22 + $0x70] sm:$0xff]  ;;  %v368_v23 = vld [vmem:[%s1954_s26 + $0x60] sm:$0xff] }
  0x2f   : > { %563 = vmatprep.mubr.f32.mxu0 %v1737_v4  ;;  %1001 = vmatpush1.msra.mxu0 %v938_v53  ;;  %v923_v21 = vld [vmem:[%s2621_s5 + $0x38] sm:$0xff]  ;;  %v922_v22 = vld [vmem:[%s2621_s5 + $0x30] sm:$0xff]  ;;  %v921_v25 = vld [vmem:[%s2621_s5 + $0x28] sm:$0xff] }
  0x30   : > { %1499 = vmatmul.mubr.msk.f32.gmra.mxu1 %vm630_vm1, %v357_v42  ;;  %1002 = vmatprep.subr.mxu0 %v937_v56  ;;  %v411_v24 = vld [vmem:[%s1895_s22 + $0x78] sm:$0xff]  ;;  %v920_v26 = vld [vmem:[%s2621_s5 + $0x20] sm:$0xff]  ;;  %v369_v28 = vld [vmem:[%s1954_s26 + $0x68] sm:$0xff]  ;;  %s2532_s22 = scalar_lea.vmem [#allocation2], %s1477_s25  ;;  %s1679_s25 = sshll.u32 %s1738_s23, 4  ;;  %s1680_s25 = int_to_ptr.vmem [resolvable:$false] %s1679_s25 }
  0x31   : > { %755 = vmatprep.mubr.f32.mxu1 %v1737_v4  ;;  %1003 = vmatpush1.msra.mxu0 %v936_v57  ;;  %v919_v27 = vld [vmem:[%s2621_s5 + $0x18] sm:$0xff]  ;;  %v918_v29 = vld [vmem:[%s2621_s5 + $0x10] sm:$0xff]  ;;  %v917_v30 = vld [vmem:[%s2621_s5 + $0x8] sm:$0xff]  ;;  %s1399_s16 = sshll.u32 %s2532_s22, 4  ;;  %s1681_s28 = scalar_lea.vmem %s1680_s25, 4096  ;;  %s2570_s16 = int_to_ptr.vmem [resolvable:$true] %s1399_s16 }
  0x32   : > { %1487 = vmatmul.mubr.msk.f32.gmra.mxu0 %vm420_vm0, %v401_v47  ;;  %1004 = vmatprep.subr.mxu0 %v935_v60  ;;  %v916_v31 = vld [vmem:[%s2621_s5] sm:$0xff]  ;;  %v979_v32 = vld [vmem:[%s2621_s5 + $0x1f8] sm:$0xff]  ;;  %v370_v33 = vld [vmem:[%s1954_s26 + $0x70] sm:$0xff]  ;;  %p1682_p0 = scmp.lt.s32.totalorder %s2570_s16, %s1680_s25 }
  0x33   : > { %569 = vmatprep.mubr.f32.mxu0 %v1737_v4  ;;  %1005 = vmatpush1.msra.mxu0 %v934_v61  ;;  %v978_v34 = vld [vmem:[%s2621_s5 + $0x1f0] sm:$0xff]  ;;  %v977_v35 = vld [vmem:[%s2621_s5 + $0x1e8] sm:$0xff]  ;;  %v976_v36 = vld [vmem:[%s2621_s5 + $0x1e0] sm:$0xff] }
  0x34   : > { %1500 = vmatmul.mubr.msk.f32.gmra.mxu1 %vm630_vm1, %v358_v46  ;;  %1006 = vmatprep.subr.mxu0 %v933_v0  ;;  %v975_v37 = vld [vmem:[%s2621_s5 + $0x1d8] sm:$0xff]  ;;  %v974_v39 = vld [vmem:[%s2621_s5 + $0x1d0] sm:$0xff]  ;;  %v973_v40 = vld [vmem:[%s2621_s5 + $0x1c8] sm:$0xff] }
  0x35   : > { %761 = vmatprep.mubr.f32.mxu1 %v1737_v4  ;;  %1007 = vmatpush1.msra.mxu0 %v932_v1  ;;  %v371_v38 = vld [vmem:[%s1954_s26 + $0x78] sm:$0xff]  ;;  %v972_v41 = vld [vmem:[%s2621_s5 + $0x1c0] sm:$0xff]  ;;  %v970_v42 = vld [vmem:[%s2621_s5 + $0x1b0] sm:$0xff]  ;;  %s1520_s26 = sshll.u32 %s1812_s13, 11  ;;  %s1675_s13 = scalar_lea.vmem %s2570_s16, 2048 }
  0x36   : > { %1488 = vmatmul.mubr.msk.f32.gmra.mxu0 %vm420_vm0, %v402_v51  ;;  %1008 = vmatprep.subr.mxu0 %v931_v5  ;;  %v969_v43 = vld [vmem:[%s2621_s5 + $0x1a8] sm:$0xff]  ;;  %v968_v44 = vld [vmem:[%s2621_s5 + $0x1a0] sm:$0xff]  ;;  %v967_v45 = vld [vmem:[%s2621_s5 + $0x198] sm:$0xff]  ;;  %s2568_s27 = scalar_lea.hbm %s2625_s9, %s1520_s26  ;;  %p1676_p11 = scmp.ne.s32.totalorder %s2570_s16, %s1675_s13 }
  0x37   : > { %575 = vmatprep.mubr.f32.mxu0 %v1737_v4  ;;  %1009 = vmatpush1.msra.mxu0 %v930_v6  ;;  %v966_v46 = vld [vmem:[%s2621_s5 + $0x190] sm:$0xff]  ;;  %v965_v47 = vld [vmem:[%s2621_s5 + $0x188] sm:$0xff]  ;;  %v964_v48 = vld [vmem:[%s2621_s5 + $0x180] sm:$0xff]  ;;  %p1683_p1 = scmp.lt.s32.totalorder %s1681_s28, %s1675_s13 }
  0x38   : > { %1501 = vmatmul.mubr.msk.f32.gmra.mxu1 %vm630_vm1, %v359_v50  ;;  %1010 = vmatprep.subr.mxu0 %v929_v9  ;;  %v963_v49 = vld [vmem:[%s2621_s5 + $0x178] sm:$0xff]  ;;  %v962_v50 = vld [vmem:[%s2621_s5 + $0x170] sm:$0xff]  ;;  %v961_v51 = vld [vmem:[%s2621_s5 + $0x168] sm:$0xff]  ;;  %p1677_p12 = pnand %p1676_p11, %p1829_p5 }
  0x39   : > { %767 = vmatprep.mubr.f32.mxu1 %v1737_v4  ;;  %1011 = vmatpush1.msra.mxu0 %v928_v10  ;;  %v960_v52 = vld [vmem:[%s2621_s5 + $0x160] sm:$0xff]  ;;  %v959_v53 = vld [vmem:[%s2621_s5 + $0x158] sm:$0xff]  ;;  %v2259_v5 = vld [vmem:[%s2623_s7 + $0x70] sm:$0xff]  ;;  %p1684_p2 = por %p1683_p1, %p1682_p0 }
  0x3a   : > { %1489 = vmatmul.mubr.msk.f32.gmra.mxu0 %vm420_vm0, %v403_v55  ;;  %1012 = vmatprep.subr.mxu0 %v927_v13  ;;  %v957_v55 = vld [vmem:[%s2621_s5 + $0x148] sm:$0xff]  ;;  %v956_v56 = vld [vmem:[%s2621_s5 + $0x140] sm:$0xff]  ;;  %v955_v57 = vld [vmem:[%s2621_s5 + $0x138] sm:$0xff]  ;;  %p1678_p13 = pneg %p1677_p12 }
  0x3b   : > { %581 = vmatprep.mubr.f32.mxu0 %v1737_v4  ;;  %1013 = vmatpush1.msra.mxu0 %v926_v14  ;;  %v952_v60 = vld [vmem:[%s2621_s5 + $0x120] sm:$0xff]  ;;  %v951_v61 = vld [vmem:[%s2621_s5 + $0x118] sm:$0xff]  ;;  %v2265_v6 = vld [vmem:[%s2623_s7 + $0xe8] sm:$0xff] }
  0x3c   : > { %1502 = vmatmul.mubr.msk.f32.gmra.mxu1 %vm630_vm1, %v360_v54  ;;  %1014 = vmatprep.subr.mxu0 %v925_v17  ;;  %v958_v54 = vld [vmem:[%s2621_s5 + $0x150] sm:$0xff]  ;;  %v948_v0 = vld [vmem:[%s2621_s5 + $0x100] sm:$0xff]  ;;  %v1216_v1 = vld [vmem:[%s2623_s7 + $0xf8] sm:$0xff]  ;;  %p1685_p3 = pnand %p1684_p2, %p1678_p13 }
  0x3d   : > { %773 = vmatprep.mubr.f32.mxu1 %v1737_v4  ;;  %1015 = vmatpush1.msra.mxu0 %v924_v18  ;;  %v2283_v9 = vld [vmem:[%s2623_s7 + $0x60] sm:$0xff]  ;;  %v2289_v10 = vld [vmem:[%s2623_s7 + $0xd8] sm:$0xff]  ;;  %v2307_v13 = vld [vmem:[%s2623_s7 + $0x50] sm:$0xff] }
  0x3e   : > { %1490 = vmatmul.mubr.msk.f32.gmra.mxu0 %vm420_vm0, %v404_v59  ;;  %1016 = vmatprep.subr.mxu0 %v923_v21  ;;  %v953_v59 = vld [vmem:[%s2621_s5 + $0x128] sm:$0xff]  ;;  %v2331_v17 = vld [vmem:[%s2623_s7 + $0x40] sm:$0xff]  ;;  %v2337_v18 = vld [vmem:[%s2623_s7 + $0xb8] sm:$0xff] }
  0x3f   : > { %587 = vmatprep.mubr.f32.mxu0 %v1737_v4  ;;  %1017 = vmatpush1.msra.mxu0 %v922_v22  ;;  %v2313_v14 = vld [vmem:[%s2623_s7 + $0xc8] sm:$0xff]  ;;  %v2355_v21 = vld [vmem:[%s2623_s7 + $0x30] sm:$0xff] }
  0x40   : > { %1503 = vmatmul.mubr.msk.f32.gmra.mxu1 %vm630_vm1, %v361_v58  ;;  %1018 = vmatprep.subr.mxu0 %v921_v25  ;;  %v954_v58 = vld [vmem:[%s2621_s5 + $0x130] sm:$0xff]  ;;  %v2361_v22 = vld [vmem:[%s2623_s7 + $0xa8] sm:$0xff]  ;;  %v2379_v25 = vld [vmem:[%s2623_s7 + $0x20] sm:$0xff] }
  0x41   : > { %779 = vmatprep.mubr.f32.mxu1 %v1737_v4  ;;  %1019 = vmatpush1.msra.mxu0 %v920_v26  ;;  %v2385_v26 = vld [vmem:[%s2623_s7 + $0x98] sm:$0xff] }
  0x42   : > { %1491 = vmatmul.mubr.msk.f32.gmra.mxu0 %vm420_vm0, %v405_v63  ;;  %1020 = vmatprep.subr.mxu0 %v919_v27  ;;  %v949_v63 = vld [vmem:[%s2621_s5 + $0x108] sm:$0xff] }
  0x43   : > { %593 = vmatprep.mubr.f32.mxu0 %v1737_v4  ;;  %1021 = vmatpush1.msra.mxu0 %v918_v29 }
  0x44   : > { %1504 = vmatmul.mubr.msk.f32.gmra.mxu1 %vm630_vm1, %v362_v62  ;;  %1022 = vmatprep.subr.mxu0 %v917_v30  ;;  %v950_v62 = vld [vmem:[%s2621_s5 + $0x110] sm:$0xff] }
  0x45   : > { %785 = vmatprep.mubr.f32.mxu1 %v1737_v4  ;;  %1023 = vmatpush1.msra.mxu0 %v916_v31 }
  0x46   : > { %1492 = vmatmul.mubr.msk.f32.gmra.mxu0 %vm420_vm0, %v406_v3  ;;  %1024 = vmatprep.subr.mxu0 %v979_v32  ;;  %v2253_v3 = vld [vmem:[%s2623_s7 + $0xf0] sm:$0xff] }
  0x47   : > { %599 = vmatprep.mubr.f32.mxu0 %v1737_v4  ;;  %1025 = vmatpush2.msra.mxu0 %v978_v34 }
  0x48   : > { %1505 = vmatmul.mubr.msk.f32.gmra.mxu1 %vm630_vm1, %v363_v2  ;;  %1026 = vmatprep.subr.mxu0 %v977_v35  ;;  %v2247_v2 = vld [vmem:[%s2623_s7 + $0x78] sm:$0xff]  ;;  %v840_v35 = vld [vmem:[%s2620_s4] sm:$0x3] }
  0x49   : > { %791 = vmatprep.mubr.f32.mxu1 %v1737_v4  ;;  %1027 = vmatpush2.msra.mxu0 %v976_v36 }
  0x4a   : > { %1493 = vmatmul.mubr.msk.f32.gmra.mxu0 %vm420_vm0, %v407_v8  ;;  %1028 = vmatprep.subr.mxu0 %v975_v37  ;;  %v2277_v8 = vld [vmem:[%s2623_s7 + $0xe0] sm:$0xff] }
  0x4b   : > { %605 = vmatprep.mubr.f32.mxu0 %v1737_v4  ;;  %1029 = vmatpush2.msra.mxu0 %v974_v39 }
  0x4c   : > { %1506 = vmatmul.mubr.msk.f32.gmra.mxu1 %vm630_vm1, %v364_v7  ;;  %1030 = vmatprep.subr.mxu0 %v973_v40  ;;  %v2271_v7 = vld [vmem:[%s2623_s7 + $0x68] sm:$0xff] }
  0x4d   : > { %797 = vmatprep.mubr.f32.mxu1 %v1737_v4  ;;  %1031 = vmatpush2.msra.mxu0 %v972_v41 }
  0x4e   : > { %1494 = vmatmul.mubr.msk.f32.gmra.mxu0 %vm420_vm0, %v408_v12  ;;  %1601 = vmatprep.subr.mxu1 %v1216_v1  ;;  %v2301_v12 = vld [vmem:[%s2623_s7 + $0xd0] sm:$0xff] }
  0x4f   : > { %611 = vmatprep.mubr.f32.mxu0 %v1737_v4  ;;  %1617 = vmatpush3.msra.mxu1 %v2247_v2 }
  0x50   : > { %1507 = vmatmul.mubr.msk.f32.gmra.mxu1 %vm630_vm1, %v365_v11  ;;  %1602 = vmatprep.subr.mxu1 %v2253_v3  ;;  %v2295_v11 = vld [vmem:[%s2623_s7 + $0x58] sm:$0xff] }
  0x51   : > { %803 = vmatprep.mubr.f32.mxu1 %v1737_v4  ;;  %1618 = vmatpush3.msra.mxu1 %v2259_v5 }
  0x52   : > { %1495 = vmatmul.mubr.msk.f32.gmra.mxu0 %vm420_vm0, %v409_v16  ;;  %1603 = vmatprep.subr.mxu1 %v2265_v6  ;;  %v2325_v16 = vld [vmem:[%s2623_s7 + $0xc0] sm:$0xff] }
  0x53   : > { %617 = vmatprep.mubr.f32.mxu0 %v1737_v4  ;;  %1619 = vmatpush3.msra.mxu1 %v2271_v7 }
  0x54   : > { %1508 = vmatmul.mubr.msk.f32.gmra.mxu1 %vm630_vm1, %v366_v15  ;;  %1604 = vmatprep.subr.mxu1 %v2277_v8  ;;  %v2319_v15 = vld [vmem:[%s2623_s7 + $0x48] sm:$0xff] }
  0x55   : > { %809 = vmatprep.mubr.f32.mxu1 %v1737_v4  ;;  %1620 = vmatpush3.msra.mxu1 %v2283_v9 }
  0x56   : > { %1496 = vmatmul.mubr.msk.f32.gmra.mxu0 %vm420_vm0, %v410_v20  ;;  %1605 = vmatprep.subr.mxu1 %v2289_v10  ;;  %v2349_v20 = vld [vmem:[%s2623_s7 + $0xb0] sm:$0xff] }
  0x57   : > { %623 = vmatprep.mubr.f32.mxu0 %v1737_v4  ;;  %1621 = vmatpush3.msra.mxu1 %v2295_v11 }
  0x58   : > { %1509 = vmatmul.mubr.msk.f32.gmra.mxu1 %vm630_vm1, %v367_v19  ;;  %1606 = vmatprep.subr.mxu1 %v2301_v12  ;;  %v2343_v19 = vld [vmem:[%s2623_s7 + $0x38] sm:$0xff] }
  0x59   : > { %815 = vmatprep.mubr.f32.mxu1 %v1737_v4  ;;  %1622 = vmatpush3.msra.mxu1 %v2307_v13 }
  0x5a   : > { %1497 = vmatmul.mubr.msk.f32.gmra.mxu0 %vm420_vm0, %v411_v24  ;;  %1607 = vmatprep.subr.mxu1 %v2313_v14  ;;  %v2373_v24 = vld [vmem:[%s2623_s7 + $0xa0] sm:$0xff] }
  0x5b   : > { %1623 = vmatpush3.msra.mxu1 %v2319_v15 }
  0x5c   : > { %1510 = vmatmul.mubr.msk.f32.gmra.mxu1 %vm630_vm1, %v368_v23  ;;  %1608 = vmatprep.subr.mxu1 %v2325_v16  ;;  %v2367_v23 = vld [vmem:[%s2623_s7 + $0x28] sm:$0xff] }
  0x5d   : > { %821 = vmatprep.mubr.f32.mxu1 %v1737_v4  ;;  %1624 = vmatpush3.msra.mxu1 %v2331_v17 }
  0x5e   : > { %1609 = vmatprep.subr.mxu1 %v2337_v18 }
  0x5f   : > { %1625 = vmatpush3.msra.mxu1 %v2343_v19 }
  0x60   : > { %1511 = vmatmul.mubr.msk.f32.gmra.mxu1 %vm630_vm1, %v369_v28  ;;  %1610 = vmatprep.subr.mxu1 %v2349_v20  ;;  %v842_v28 = vlaneseq }
  0x61   : > { %827 = vmatprep.mubr.f32.mxu1 %v1737_v4  ;;  %1626 = vmatpush3.msra.mxu1 %v2355_v21 }
  0x62   : > { %1611 = vmatprep.subr.mxu1 %v2361_v22  ;;  %v2388_v30 = vshrl.u32 %v842_v28, 7 }
  0x63   : > { %1627 = vmatpush3.msra.mxu1 %v2367_v23 }
  0x64   : > { %1512 = vmatmul.mubr.msk.f32.gmra.mxu1 %vm630_vm1, %v370_v33  ;;  %1612 = vmatprep.subr.mxu1 %v2373_v24  ;;  %v844_v33 = vsub.s32 0, %v2388_v30  ;;  %v848_v36 = vsub.s32 1, %v2388_v30 }
  0x65   : > { %833 = vmatprep.mubr.f32.mxu1 %v1737_v4  ;;  %v971_v4 = vld [vmem:[%s2621_s5 + $0x1b8] sm:$0xff]  ;;  %1628 = vmatpush3.msra.mxu1 %v2379_v25 }
  0x66   : > { %1032 = vmatprep.subr.mxu0 %v971_v4  ;;  %1613 = vmatprep.subr.mxu1 %v2385_v26  ;;  %v2397_v39 = vrot.slane %v840_v35, %v844_v33  ;;  %v2401_v4 = vrot.slane %v840_v35, %v848_v36 }
  0x67   : > { %1033 = vmatpush2.msra.mxu0 %v970_v42 }
  0x68   : > { %1513 = vmatmul.mubr.msk.f32.gmra.mxu1 %vm630_vm1, %v371_v38  ;;  %1034 = vmatprep.subr.mxu0 %v969_v43 }
  0x69   : > { %1035 = vmatpush2.msra.mxu0 %v968_v44 }
  0x6a   : > { %1036 = vmatprep.subr.mxu0 %v967_v45 }
  0x6b   : > { %1037 = vmatpush2.msra.mxu0 %v966_v46 }
  0x6c   : > { %1038 = vmatprep.subr.mxu0 %v965_v47 }
  0x6d   : > { %1039 = vmatpush2.msra.mxu0 %v964_v48 }
  0x6e   : > { %1040 = vmatprep.subr.mxu0 %v963_v49 }
  0x6f   : > { %1041 = vmatpush2.msra.mxu0 %v962_v50 }
  0x70   : > { %1042 = vmatprep.subr.mxu0 %v961_v51 }
  0x71   : > { %1043 = vmatpush2.msra.mxu0 %v960_v52 }
  0x72   : > { %1044 = vmatprep.subr.mxu0 %v959_v53 }
  0x73   : > { %1045 = vmatpush2.msra.mxu0 %v958_v54 }
  0x74   : > { %1046 = vmatprep.subr.mxu0 %v957_v55 }
  0x75   : > { %1047 = vmatpush2.msra.mxu0 %v956_v56 }
  0x76   : > { %1048 = vmatprep.subr.mxu0 %v955_v57 }
  0x77   : > { %1049 = vmatpush2.msra.mxu0 %v954_v58 }
  0x78   : > { %1050 = vmatprep.subr.mxu0 %v953_v59 }
  0x79   : > { %1051 = vmatpush2.msra.mxu0 %v952_v60 }
  0x7a   : > { %1052 = vmatprep.subr.mxu0 %v951_v61 }
  0x7b   : > { %1053 = vmatpush2.msra.mxu0 %v950_v62 }
  0x7c   : > { %1054 = vmatprep.subr.mxu0 %v949_v63 }
  0x7d   : > { %1055 = vmatpush2.msra.mxu0 %v948_v0 }
  0x7e   : > { %1521 = vmatprep.subr.mxu0 %v1216_v1 }
  0xde   : > { %v535_v27 = vpop.f32.mrf.mxu0 }
  0xe0   : > { %v537_v29 = vpop.f32.mrf.mxu0 }
  0xe2   : > { %v541_v31 = vpop.f32.mrf.mxu0 }
  0xe4   : > { %v543_v32 = vpop.f32.mrf.mxu0 }
  0xe6   : > { %v547_v34 = vpop.f32.mrf.mxu0 }
  0xe8   : > { %v549_v37 = vpop.f32.mrf.mxu0 }
  0xea   : > { %v553_v40 = vpop.f32.mrf.mxu0 }
  0xec   : > { %v745_v38 = vpop.f32.mrf.mxu1  ;;  %v555_v43 = vpop.f32.mrf.mxu0 }
  0xed   : > { %v746_v41 = vadd.f32 %v745_v38, %v535_v27 }
  0xee   : > { %v747_v42 = vpop.f32.mrf.mxu1  ;;  %v559_v47 = vpop.f32.mrf.mxu0 }
  0xef   : > { %v748_v44 = vadd.f32 %v747_v42, %v537_v29  ;;  %v852_v45 = vadd.f32 %v2397_v39, %v746_v41 }
  0xf0   : > { %v751_v46 = vpop.f32.mrf.mxu1  ;;  %v561_v51 = vpop.f32.mrf.mxu0 }
  0xf1   : > { %v853_v48 = vadd.f32 %v2401_v4, %v748_v44  ;;  %v752_v49 = vadd.f32 %v751_v46, %v541_v31  ;;  %v884_v54 = vmax.f32 %v852_v45, 0.0 }
  0xf2   : > { %v753_v50 = vpop.f32.mrf.mxu1  ;;  %v565_v57 = vpop.f32.mrf.mxu0 }
  0xf3   : > { %v885_v52 = vmax.f32 %v853_v48, 0.0  ;;  %v754_v53 = vadd.f32 %v753_v50, %v543_v32  ;;  %v854_v55 = vadd.f32 %v2397_v39, %v752_v49 }
  0xf4   : > { %v757_v56 = vpop.f32.mrf.mxu1  ;;  %v567_v61 = vpop.f32.mrf.mxu0 }
  0xf5   : > { %v855_v58 = vadd.f32 %v2401_v4, %v754_v53  ;;  %v758_v59 = vadd.f32 %v757_v56, %v547_v34  ;;  %1056 = vmatprep.mubr.f32.mxu0 %v885_v52  ;;  %v886_v0 = vmax.f32 %v854_v55, 0.0 }
  0xf6   : > { %v759_v60 = vpop.f32.mrf.mxu1  ;;  %1057 = vmatmul.mubr.f32.vlgmr.msra.gmra.mxu0 %v884_v54  ;;  %v571_v28 = vpop.f32.mrf.mxu0 }
  0xf7   : > { %v887_v62 = vmax.f32 %v855_v58, 0.0  ;;  %v760_v63 = vadd.f32 %v759_v60, %v549_v37  ;;  %1522 = vmatpush3.msra.mxu0 %v2247_v2  ;;  %v856_v1 = vadd.f32 %v2397_v39, %v758_v59 }
  0xf8   : > { %v763_v27 = vpop.f32.mrf.mxu1  ;;  %1523 = vmatprep.subr.mxu0 %v2253_v3  ;;  %v573_v34 = vpop.f32.mrf.mxu0 }
  0xf9   : > { %v857_v29 = vadd.f32 %v2401_v4, %v760_v63  ;;  %v764_v31 = vadd.f32 %v763_v27, %v553_v40  ;;  %1062 = vmatprep.mubr.f32.mxu0 %v887_v62  ;;  %1524 = vmatpush3.msra.mxu0 %v2259_v5  ;;  %v888_v37 = vmax.f32 %v856_v1, 0.0 }
  0xfa   : > { %v765_v32 = vpop.f32.mrf.mxu1  ;;  %1063 = vmatmul.mubr.f32.gmra.mxu0 %v886_v0  ;;  %1525 = vmatprep.subr.mxu0 %v2265_v6  ;;  %v577_v3 = vpop.f32.mrf.mxu0 }
  0xfb   : > { %v889_v35 = vmax.f32 %v857_v29, 0.0  ;;  %v766_v2 = vadd.f32 %v765_v32, %v555_v43  ;;  %1526 = vmatpush3.msra.mxu0 %v2271_v7  ;;  %v858_v38 = vadd.f32 %v2397_v39, %v764_v31 }
  0xfc   : > { %v769_v41 = vpop.f32.mrf.mxu1  ;;  %1527 = vmatprep.subr.mxu0 %v2277_v8  ;;  %v579_v6 = vpop.f32.mrf.mxu0 }
  0xfd   : > { %v859_v40 = vadd.f32 %v2401_v4, %v766_v2  ;;  %v770_v42 = vadd.f32 %v769_v41, %v559_v47  ;;  %1068 = vmatprep.mubr.f32.mxu0 %v889_v35  ;;  %1528 = vmatpush3.msra.mxu0 %v2283_v9  ;;  %v890_v44 = vmax.f32 %v858_v38, 0.0 }
  0xfe   : > { %v771_v5 = vpop.f32.mrf.mxu1  ;;  %1069 = vmatmul.mubr.f32.gmra.mxu0 %v888_v37  ;;  %1529 = vmatprep.subr.mxu0 %v2289_v10  ;;  %v583_v8 = vpop.f32.mrf.mxu0 }
  0xff   : > { %v891_v43 = vmax.f32 %v859_v40, 0.0  ;;  %v772_v7 = vadd.f32 %v771_v5, %v561_v51  ;;  %1530 = vmatpush3.msra.mxu0 %v2295_v11  ;;  %v860_v45 = vadd.f32 %v2397_v39, %v770_v42 }
 0x100   : > { %v775_v46 = vpop.f32.mrf.mxu1  ;;  %1531 = vmatprep.subr.mxu0 %v2301_v12  ;;  %v585_v10 = vpop.f32.mrf.mxu0 }
 0x101   : > { %v861_v47 = vadd.f32 %v2401_v4, %v772_v7  ;;  %v776_v48 = vadd.f32 %v775_v46, %v565_v57  ;;  %1074 = vmatprep.mubr.f32.mxu0 %v891_v43  ;;  %1532 = vmatpush3.msra.mxu0 %v2307_v13  ;;  %v892_v50 = vmax.f32 %v860_v45, 0.0 }
 0x102   : > { %v777_v9 = vpop.f32.mrf.mxu1  ;;  %1075 = vmatmul.mubr.f32.gmra.mxu0 %v890_v44  ;;  %1533 = vmatprep.subr.mxu0 %v2313_v14  ;;  %v589_v12 = vpop.f32.mrf.mxu0 }
 0x103   : > { %v893_v49 = vmax.f32 %v861_v47, 0.0  ;;  %v778_v11 = vadd.f32 %v777_v9, %v567_v61  ;;  %1534 = vmatpush3.msra.mxu0 %v2319_v15  ;;  %v862_v51 = vadd.f32 %v2397_v39, %v776_v48 }
 0x104   : > { %v781_v52 = vpop.f32.mrf.mxu1  ;;  %1535 = vmatprep.subr.mxu0 %v2325_v16  ;;  %v591_v14 = vpop.f32.mrf.mxu0 }
 0x105   : > { %v863_v53 = vadd.f32 %v2401_v4, %v778_v11  ;;  %v782_v54 = vadd.f32 %v781_v52, %v571_v28  ;;  %1080 = vmatprep.mubr.f32.mxu0 %v893_v49  ;;  %1536 = vmatpush3.msra.mxu0 %v2331_v17  ;;  %v894_v56 = vmax.f32 %v862_v51, 0.0 }
 0x106   : > { %v783_v13 = vpop.f32.mrf.mxu1  ;;  %1081 = vmatmul.mubr.f32.gmra.mxu0 %v892_v50  ;;  %1537 = vmatprep.subr.mxu0 %v2337_v18  ;;  %v595_v16 = vpop.f32.mrf.mxu0 }
 0x107   : > { %v895_v55 = vmax.f32 %v863_v53, 0.0  ;;  %v784_v15 = vadd.f32 %v783_v13, %v573_v34  ;;  %1538 = vmatpush3.msra.mxu0 %v2343_v19  ;;  %v864_v57 = vadd.f32 %v2397_v39, %v782_v54 }
 0x108   : > { %v787_v58 = vpop.f32.mrf.mxu1  ;;  %1539 = vmatprep.subr.mxu0 %v2349_v20  ;;  %v597_v18 = vpop.f32.mrf.mxu0 }
 0x109   : > { %v865_v59 = vadd.f32 %v2401_v4, %v784_v15  ;;  %v788_v60 = vadd.f32 %v787_v58, %v577_v3  ;;  %1086 = vmatprep.mubr.f32.mxu0 %v895_v55  ;;  %1540 = vmatpush3.msra.mxu0 %v2355_v21  ;;  %v896_v62 = vmax.f32 %v864_v57, 0.0 }
 0x10a   : > { %v789_v17 = vpop.f32.mrf.mxu1  ;;  %1087 = vmatmul.mubr.f32.gmra.mxu0 %v894_v56  ;;  %1541 = vmatprep.subr.mxu0 %v2361_v22  ;;  %v601_v20 = vpop.f32.mrf.mxu0 }
 0x10b   : > { %v897_v61 = vmax.f32 %v865_v59, 0.0  ;;  %v790_v19 = vadd.f32 %v789_v17, %v579_v6  ;;  %1542 = vmatpush3.msra.mxu0 %v2367_v23  ;;  %v866_v63 = vadd.f32 %v2397_v39, %v788_v60 }
 0x10c   : > { %v793_v0 = vpop.f32.mrf.mxu1  ;;  %1543 = vmatprep.subr.mxu0 %v2373_v24  ;;  %v603_v22 = vpop.f32.mrf.mxu0 }
 0x10d   : > { %v867_v1 = vadd.f32 %v2401_v4, %v790_v19  ;;  %v794_v27 = vadd.f32 %v793_v0, %v583_v8  ;;  %1092 = vmatprep.mubr.f32.mxu0 %v897_v61  ;;  %1544 = vmatpush3.msra.mxu0 %v2379_v25  ;;  %v898_v29 = vmax.f32 %v866_v63, 0.0 }
 0x10e   : > { %v795_v21 = vpop.f32.mrf.mxu1  ;;  %1093 = vmatmul.mubr.f32.gmra.mxu0 %v896_v62  ;;  %1545 = vmatprep.subr.mxu0 %v2385_v26  ;;  %v607_v34 = vpop.f32.mrf.mxu0 }
 0x10f   : > { %v899_v28 = vmax.f32 %v867_v1, 0.0  ;;  %v796_v23 = vadd.f32 %v795_v21, %v585_v10  ;;  %v868_v31 = vadd.f32 %v2397_v39, %v794_v27 }
 0x110   : > { %v799_v32 = vpop.f32.mrf.mxu1  ;;  %v609_v37 = vpop.f32.mrf.mxu0 }
 0x111   : > { %v869_v24 = vadd.f32 %v2401_v4, %v796_v23  ;;  %v800_v35 = vadd.f32 %v799_v32, %v589_v12  ;;  %1098 = vmatprep.mubr.f32.mxu0 %v899_v28  ;;  %v900_v41 = vmax.f32 %v868_v31, 0.0 }
 0x112   : > { %v801_v2 = vpop.f32.mrf.mxu1  ;;  %1099 = vmatmul.mubr.f32.gmra.mxu0 %v898_v29  ;;  %v613_v6 = vpop.f32.mrf.mxu0 }
 0x113   : > { %v901_v25 = vmax.f32 %v869_v24, 0.0  ;;  %v802_v38 = vadd.f32 %v801_v2, %v591_v14  ;;  %v870_v3 = vadd.f32 %v2397_v39, %v800_v35 }
 0x114   : > { %v805_v26 = vpop.f32.mrf.mxu1  ;;  %v615_v9 = vpop.f32.mrf.mxu0 }
 0x115   : > { %v871_v40 = vadd.f32 %v2401_v4, %v802_v38  ;;  %v806_v42 = vadd.f32 %v805_v26, %v595_v16  ;;  %1104 = vmatprep.mubr.f32.mxu0 %v901_v25  ;;  %v902_v44 = vmax.f32 %v870_v3, 0.0  ;;  %v1203_v3 = vld [vmem:[%s2623_s7 + $0x90] sm:$0xff]  ;;  %v1186_v26 = vld [vmem:[%s2623_s7 + $0x8] sm:$0xff] }
 0x116   : > { %v807_v5 = vpop.f32.mrf.mxu1  ;;  %1105 = vmatmul.mubr.f32.gmra.mxu0 %v900_v41  ;;  %v619_v54 = vpop.f32.mrf.mxu0  ;;  %v1188_v41 = vld [vmem:[%s2623_s7 + $0x18] sm:$0xff] }
 0x117   : > { %v903_v43 = vmax.f32 %v871_v40, 0.0  ;;  %v808_v7 = vadd.f32 %v807_v5, %v597_v18  ;;  %v872_v45 = vadd.f32 %v2397_v39, %v806_v42  ;;  %1629 = vmatpush3.msra.mxu1 %v1188_v41  ;;  %1546 = vmatpush3.msra.mxu0 %v1188_v41  ;;  %v1201_v40 = vld [vmem:[%s2623_s7 + $0x80] sm:$0xff] }
 0x118   : > { %v811_v46 = vpop.f32.mrf.mxu1  ;;  %v621_v59 = vpop.f32.mrf.mxu0  ;;  %1547 = vmatprep.subr.mxu0 %v1203_v3  ;;  %1614 = vmatprep.subr.mxu1 %v1203_v3  ;;  %v1185_v42 = vld [vmem:[%s2623_s7] sm:$0xff] }
 0x119   : > { %v873_v8 = vadd.f32 %v2401_v4, %v808_v7  ;;  %v812_v47 = vadd.f32 %v811_v46, %v601_v20  ;;  %1110 = vmatprep.mubr.f32.mxu0 %v903_v43  ;;  %v904_v11 = vmax.f32 %v872_v45, 0.0  ;;  %v980_v5 = vld [vmem:[%s2622_s6] sm:$0x3] }
 0x11a   : > { %v813_v48 = vpop.f32.mrf.mxu1  ;;  %1111 = vmatmul.mubr.f32.gmra.mxu0 %v902_v44  ;;  %v625_v0 = vpop.f32.mrf.mxu0  ;;  %v2489_v43 = vrot.slane %v980_v5, %v848_v36 }
 0x11b   : > { %v905_v10 = vmax.f32 %v873_v8, 0.0  ;;  %v814_v49 = vadd.f32 %v813_v48, %v603_v22  ;;  %v874_v50 = vadd.f32 %v2397_v39, %v812_v47 }
 0x11c   : > { %v817_v51 = vpop.f32.mrf.mxu1  ;;  %v627_v31 = vpop.f32.mrf.mxu0 }
 0x11d   : > { %v875_v52 = vadd.f32 %v2401_v4, %v814_v49  ;;  %v818_v12 = vadd.f32 %v817_v51, %v607_v34  ;;  %1116 = vmatprep.mubr.f32.mxu0 %v905_v10  ;;  %v906_v55 = vmax.f32 %v874_v50, 0.0 }
 0x11e   : > { %v819_v53 = vpop.f32.mrf.mxu1  ;;  %1117 = vmatmul.mubr.f32.gmra.mxu0 %v904_v11 }
 0x11f   : > { %v907_v13 = vmax.f32 %v875_v52, 0.0  ;;  %v820_v14 = vadd.f32 %v819_v53, %v609_v37  ;;  %v876_v15 = vadd.f32 %v2397_v39, %v818_v12 }
 0x120   : > { %v823_v56 = vpop.f32.mrf.mxu1 }
 0x121   : > { %v877_v57 = vadd.f32 %v2401_v4, %v820_v14  ;;  %v824_v58 = vadd.f32 %v823_v56, %v613_v6  ;;  %1122 = vmatprep.mubr.f32.mxu0 %v907_v13  ;;  %v908_v18 = vmax.f32 %v876_v15, 0.0  ;;  %v2485_v6 = vrot.slane %v980_v5, %v844_v33 }
 0x122   : > { %v825_v16 = vpop.f32.mrf.mxu1  ;;  %1123 = vmatmul.mubr.f32.gmra.mxu0 %v906_v55 }
 0x123   : > { %v909_v60 = vmax.f32 %v877_v57, 0.0  ;;  %v826_v17 = vadd.f32 %v825_v16, %v615_v9  ;;  %v878_v61 = vadd.f32 %v2397_v39, %v824_v58 }
 0x124   : > { %v829_v19 = vpop.f32.mrf.mxu1 }
 0x125   : > { %v879_v62 = vadd.f32 %v2401_v4, %v826_v17  ;;  %v830_v63 = vadd.f32 %v829_v19, %v619_v54  ;;  %1128 = vmatprep.mubr.f32.mxu0 %v909_v60  ;;  %v910_v21 = vmax.f32 %v878_v61, 0.0 }
 0x126   : > { %v831_v20 = vpop.f32.mrf.mxu1  ;;  %1129 = vmatmul.mubr.f32.gmra.mxu0 %v908_v18 }
 0x127   : > { %v911_v1 = vmax.f32 %v879_v62, 0.0  ;;  %v832_v27 = vadd.f32 %v831_v20, %v621_v59  ;;  %v880_v22 = vadd.f32 %v2397_v39, %v830_v63 }
 0x128   : > { %v835_v28 = vpop.f32.mrf.mxu1 }
 0x129   : > { %v881_v23 = vadd.f32 %v2401_v4, %v832_v27  ;;  %v836_v29 = vadd.f32 %v835_v28, %v625_v0  ;;  %1134 = vmatprep.mubr.f32.mxu0 %v911_v1  ;;  %v912_v35 = vmax.f32 %v880_v22, 0.0 }
 0x12a   : > { %v837_v32 = vpop.f32.mrf.mxu1  ;;  %1135 = vmatmul.mubr.f32.gmra.mxu0 %v910_v21 }
 0x12b   : > { %v913_v34 = vmax.f32 %v881_v23, 0.0  ;;  %v838_v24 = vadd.f32 %v837_v32, %v627_v31  ;;  %v882_v2 = vadd.f32 %v2397_v39, %v836_v29  ;;  %v1187_v39 = vld [vmem:[%s2623_s7 + $0x10] sm:$0xff] }
 0x12c   : > { %1548 = vmatpush3.msra.mxu0 %v1187_v39  ;;  %1630 = vmatpush3.msra.mxu1 %v1187_v39 }
 0x12d   : > { %v883_v37 = vadd.f32 %v2401_v4, %v838_v24  ;;  %1140 = vmatprep.mubr.f32.mxu0 %v913_v34  ;;  %v914_v38 = vmax.f32 %v882_v2, 0.0  ;;  %v1202_v4 = vld [vmem:[%s2623_s7 + $0x88] sm:$0xff] }
 0x12e   : > { %1141 = vmatmul.mubr.f32.gmra.mxu0 %v912_v35  ;;  %1549 = vmatprep.subr.mxu0 %v1202_v4 }
 0x12f   : > { %v915_v25 = vmax.f32 %v883_v37, 0.0  ;;  %1615 = vmatprep.subr.mxu1 %v1202_v4  ;;  %1550 = vmatpush3.msra.mxu0 %v1186_v26 }
 0x130   : > { %1631 = vmatpush3.msra.mxu1 %v1186_v26  ;;  %1551 = vmatprep.subr.mxu0 %v1201_v40 }
 0x131   : > { %1146 = vmatprep.mubr.f32.mxu0 %v915_v25  ;;  %1616 = vmatprep.subr.mxu1 %v1201_v40 }
 0x132   : > { %1147 = vmatmul.mubr.f32.gmra.mxu0 %v914_v38  ;;  %1632 = vmatpush3.msra.mxu1 %v1185_v42 }
 0x133   : > { %1552 = vmatpush3.msra.mxu0 %v1185_v42 }
 0x1b6   : > { %v1058_v7 = vpop.f32.mrf.mxu0 }
 0x1b7   : > { %v1059_v44 = vadd.f32 %v1058_v7, %v2485_v6 }
 0x1b8   : > { %v1060_v45 = vpop.f32.mrf.mxu0 }
 0x1b9   : > { %v1061_v46 = vadd.f32 %v1060_v45, %v2489_v43  ;;  %v1153_v48 = vmax.f32 %v1059_v44, 0.0 }
 0x1ba   : > { %v1064_v8 = vpop.f32.mrf.mxu0 }
 0x1bb   : > { %v1154_v47 = vmax.f32 %v1061_v46, 0.0  ;;  %v1065_v9 = vadd.f32 %v1064_v8, %v2485_v6 }
 0x1bc   : > { %v1066_v10 = vpop.f32.mrf.mxu0 }
 0x1bd   : > { %v1067_v49 = vadd.f32 %v1066_v10, %v2489_v43  ;;  %1288 = vmatprep.mubr.f32.mxu0 %v1154_v47  ;;  %v1155_v36 = vmax.f32 %v1065_v9, 0.0 }
 0x1be   : > { %v1070_v33 = vpop.f32.mrf.mxu0  ;;  %1289 = vmatmul.mubr.f32.vlgmr.msra.gmra.mxu0 %v1153_v48 }
 0x1bf   : > { %v1156_v30 = vmax.f32 %v1067_v49, 0.0  ;;  %v1071_v11 = vadd.f32 %v1070_v33, %v2485_v6 }
 0x1c0   : > { %v1072_v50 = vpop.f32.mrf.mxu0 }
 0x1c1   : > { %v1073_v51 = vadd.f32 %v1072_v50, %v2489_v43  ;;  %1293 = vmatprep.mubr.f32.mxu0 %v1156_v30  ;;  %v1157_v53 = vmax.f32 %v1071_v11, 0.0 }
 0x1c2   : > { %v1076_v52 = vpop.f32.mrf.mxu0  ;;  %1294 = vmatmul.mubr.f32.gmra.mxu0 %v1155_v36 }
 0x1c3   : > { %v1158_v12 = vmax.f32 %v1073_v51, 0.0  ;;  %v1077_v54 = vadd.f32 %v1076_v52, %v2485_v6 }
 0x1c4   : > { %v1078_v13 = vpop.f32.mrf.mxu0 }
 0x1c5   : > { %v1079_v14 = vadd.f32 %v1078_v13, %v2489_v43  ;;  %1298 = vmatprep.mubr.f32.mxu1 %v1158_v12  ;;  %v1159_v56 = vmax.f32 %v1077_v54, 0.0 }
 0x1c6   : > { %v1082_v55 = vpop.f32.mrf.mxu0  ;;  %1299 = vmatmul.mubr.f32.vlgmr.msra.gmra.mxu1 %v1157_v53 }
 0x1c7   : > { %v1160_v15 = vmax.f32 %v1079_v14, 0.0  ;;  %v1083_v57 = vadd.f32 %v1082_v55, %v2485_v6 }
 0x1c8   : > { %v1084_v58 = vpop.f32.mrf.mxu0 }
 0x1c9   : > { %v1085_v16 = vadd.f32 %v1084_v58, %v2489_v43  ;;  %1303 = vmatprep.mubr.f32.mxu1 %v1160_v15  ;;  %v1161_v17 = vmax.f32 %v1083_v57, 0.0 }
 0x1ca   : > { %v1088_v59 = vpop.f32.mrf.mxu0  ;;  %1304 = vmatmul.mubr.f32.gmra.mxu1 %v1159_v56 }
 0x1cb   : > { %v1162_v60 = vmax.f32 %v1085_v16, 0.0  ;;  %v1089_v18 = vadd.f32 %v1088_v59, %v2485_v6 }
 0x1cc   : > { %v1090_v61 = vpop.f32.mrf.mxu0 }
 0x1cd   : > { %v1091_v19 = vadd.f32 %v1090_v61, %v2489_v43  ;;  %1308 = vmatprep.mubr.f32.mxu1 %v1162_v60  ;;  %v1163_v0 = vmax.f32 %v1089_v18, 0.0 }
 0x1ce   : > { %v1094_v62 = vpop.f32.mrf.mxu0  ;;  %1309 = vmatmul.mubr.f32.gmra.mxu1 %v1161_v17 }
 0x1cf   : > { %v1164_v63 = vmax.f32 %v1091_v19, 0.0  ;;  %v1095_v20 = vadd.f32 %v1094_v62, %v2485_v6 }
 0x1d0   : > { %v1096_v1 = vpop.f32.mrf.mxu0 }
 0x1d1   : > { %v1097_v27 = vadd.f32 %v1096_v1, %v2489_v43  ;;  %1313 = vmatprep.mubr.f32.mxu1 %v1164_v63  ;;  %v1165_v28 = vmax.f32 %v1095_v20, 0.0  ;;  %v2529_v63 = vld [vmem:[%s2624_s8] ss:$0 sm:$0xff] }
 0x1d2   : > { %v1100_v21 = vpop.f32.mrf.mxu0  ;;  %1314 = vmatmul.mubr.f32.gmra.mxu1 %v1163_v0 }
 0x1d3   : > { %v1166_v22 = vmax.f32 %v1097_v27, 0.0  ;;  %v1101_v23 = vadd.f32 %v1100_v21, %v2485_v6 }
 0x1d4   : > { %v1102_v29 = vpop.f32.mrf.mxu0 }
 0x1d5   : > { %v1103_v31 = vadd.f32 %v1102_v29, %v2489_v43  ;;  %1318 = vmatprep.mubr.f32.mxu1 %v1166_v22  ;;  %v1167_v24 = vmax.f32 %v1101_v23, 0.0 }
 0x1d6   : > { %v1106_v32 = vpop.f32.mrf.mxu0  ;;  %1319 = vmatmul.mubr.f32.gmra.mxu1 %v1165_v28 }
 0x1d7   : > { %v1168_v34 = vmax.f32 %v1103_v31, 0.0  ;;  %v1107_v35 = vadd.f32 %v1106_v32, %v2485_v6 }
 0x1d8   : > { %v1108_v2 = vpop.f32.mrf.mxu0 }
 0x1d9   : > { %v1109_v37 = vadd.f32 %v1108_v2, %v2489_v43  ;;  %1323 = vmatprep.mubr.f32.mxu1 %v1168_v34  ;;  %v1169_v41 = vmax.f32 %v1107_v35, 0.0 }
 0x1da   : > { %v1112_v25 = vpop.f32.mrf.mxu0  ;;  %1324 = vmatmul.mubr.f32.gmra.mxu1 %v1167_v24 }
 0x1db   : > { %v1170_v38 = vmax.f32 %v1109_v37, 0.0  ;;  %v1113_v3 = vadd.f32 %v1112_v25, %v2485_v6 }
 0x1dc   : > { %v1114_v39 = vpop.f32.mrf.mxu0 }
 0x1dd   : > { %v1115_v4 = vadd.f32 %v1114_v39, %v2489_v43  ;;  %1328 = vmatprep.mubr.f32.mxu1 %v1170_v38  ;;  %v1171_v42 = vmax.f32 %v1113_v3, 0.0 }
 0x1de   : > { %v1118_v26 = vpop.f32.mrf.mxu0  ;;  %1329 = vmatmul.mubr.f32.gmra.mxu1 %v1169_v41 }
 0x1df   : > { %v1172_v40 = vmax.f32 %v1115_v4, 0.0  ;;  %v1119_v5 = vadd.f32 %v1118_v26, %v2485_v6 }
 0x1e0   : > { %v1120_v7 = vpop.f32.mrf.mxu0 }
 0x1e1   : > { %v1121_v44 = vadd.f32 %v1120_v7, %v2489_v43  ;;  %1333 = vmatprep.mubr.f32.mxu1 %v1172_v40  ;;  %v1173_v8 = vmax.f32 %v1119_v5, 0.0 }
 0x1e2   : > { %v1124_v45 = vpop.f32.mrf.mxu0  ;;  %1334 = vmatmul.mubr.f32.gmra.mxu1 %v1171_v42 }
 0x1e3   : > { %v1174_v46 = vmax.f32 %v1121_v44, 0.0  ;;  %v1125_v47 = vadd.f32 %v1124_v45, %v2485_v6 }
 0x1e4   : > { %v1126_v48 = vpop.f32.mrf.mxu0 }
 0x1e5   : > { %v1127_v9 = vadd.f32 %v1126_v48, %v2489_v43  ;;  %1338 = vmatprep.mubr.f32.mxu1 %v1174_v46  ;;  %v1175_v33 = vmax.f32 %v1125_v47, 0.0 }
 0x1e6   : > { %v1130_v10 = vpop.f32.mrf.mxu0  ;;  %1339 = vmatmul.mubr.f32.gmra.mxu1 %v1173_v8 }
 0x1e7   : > { %v1176_v49 = vmax.f32 %v1127_v9, 0.0  ;;  %v1131_v30 = vadd.f32 %v1130_v10, %v2485_v6 }
 0x1e8   : > { %v1132_v36 = vpop.f32.mrf.mxu0 }
 0x1e9   : > { %v1133_v11 = vadd.f32 %v1132_v36, %v2489_v43  ;;  %1343 = vmatprep.mubr.f32.mxu1 %v1176_v49  ;;  %v1177_v52 = vmax.f32 %v1131_v30, 0.0 }
 0x1ea   : > { %v1136_v50 = vpop.f32.mrf.mxu0  ;;  %1344 = vmatmul.mubr.f32.gmra.mxu1 %v1175_v33 }
 0x1eb   : > { %v1178_v51 = vmax.f32 %v1133_v11, 0.0  ;;  %v1137_v12 = vadd.f32 %v1136_v50, %v2485_v6 }
 0x1ec   : > { %v1138_v53 = vpop.f32.mrf.mxu0 }
 0x1ed   : > { %v1139_v54 = vadd.f32 %v1138_v53, %v2489_v43  ;;  %1348 = vmatprep.mubr.f32.mxu1 %v1178_v51  ;;  %v1179_v55 = vmax.f32 %v1137_v12, 0.0 }
 0x1ee   : > { %v1142_v13 = vpop.f32.mrf.mxu0  ;;  %1349 = vmatmul.mubr.f32.gmra.mxu1 %v1177_v52 }
 0x1ef   : > { %v1180_v14 = vmax.f32 %v1139_v54, 0.0  ;;  %v1143_v15 = vadd.f32 %v1142_v13, %v2485_v6 }
 0x1f0   : > { %v1144_v56 = vpop.f32.mrf.mxu0 }
 0x1f1   : > { %v1145_v57 = vadd.f32 %v1144_v56, %v2489_v43  ;;  %1353 = vmatprep.mubr.f32.mxu1 %v1180_v14  ;;  %v1181_v59 = vmax.f32 %v1143_v15, 0.0 }
 0x1f2   : > { %v1148_v58 = vpop.f32.mrf.mxu0  ;;  %1354 = vmatmul.mubr.f32.gmra.mxu1 %v1179_v55 }
 0x1f3   : > { %v1182_v16 = vmax.f32 %v1145_v57, 0.0  ;;  %v1149_v60 = vadd.f32 %v1148_v58, %v2485_v6 }
 0x1f4   : > { %v1150_v17 = vpop.f32.mrf.mxu0 }
 0x1f5   : > { %v1151_v18 = vadd.f32 %v1150_v17, %v2489_v43  ;;  %1358 = vmatprep.mubr.f32.mxu1 %v1182_v16  ;;  %v1183_v19 = vmax.f32 %v1149_v60, 0.0 }
 0x1f6   : > { %1359 = vmatmul.mubr.f32.gmra.mxu1 %v1181_v59 }
 0x1f7   : > { %v1184_v61 = vmax.f32 %v1151_v18, 0.0 }
 0x1f9   : > { %1363 = vmatprep.mubr.f32.mxu1 %v1184_v61 }
 0x1fa   : > { %1364 = vmatmul.mubr.f32.gmra.mxu1 %v1183_v19 }
 0x27e   : > { %v1553_v62 = vpop.f32.mrf.mxu0 }
 0x280   : > { %v1554_v0 = vpop.f32.mrf.mxu0 }
 0x281   : > { %v1555_v6 = vadd.f32 %v1554_v0, %v1553_v62 }
 0x282   : > { %v1556_v20 = vpop.f32.mrf.mxu0 }
 0x283   : > { %v1291_v43 = vadd.f32 %v1555_v6, %v2529_v63 }
 0x284   : > { %v1557_v1 = vpop.f32.mrf.mxu0 }
 0x285   : > { %1369 = vst [vmem:[%s2532_s22] sm:$0xff] %v1291_v43  ;;  %v1558_v27 = vadd.f32 %v1557_v1, %v1556_v20 }
 0x286   : > { %v1559_v21 = vpop.f32.mrf.mxu1 }
 0x287   : > { %v1296_v22 = vadd.f32 %v1558_v27, %v2529_v63 }
 0x288   : > { %v1560_v28 = vpop.f32.mrf.mxu1 }
 0x289   : > { %1370 = vst [vmem:[%s2532_s22 + $0x8] sm:$0xff] %v1296_v22  ;;  %v1561_v23 = vadd.f32 %v1560_v28, %v1559_v21 }
 0x28a   : > { %v1562_v29 = vpop.f32.mrf.mxu1 }
 0x28b   : > { %v1301_v31 = vadd.f32 %v1561_v23, %v2529_v63 }
 0x28c   : > { %v1563_v32 = vpop.f32.mrf.mxu1 }
 0x28d   : > { %1371 = vst [vmem:[%s2532_s22 + $0x10] sm:$0xff] %v1301_v31  ;;  %v1564_v34 = vadd.f32 %v1563_v32, %v1562_v29 }
 0x28e   : > { %v1565_v24 = vpop.f32.mrf.mxu1 }
 0x28f   : > { %v1306_v35 = vadd.f32 %v1564_v34, %v2529_v63 }
 0x290   : > { %v1566_v2 = vpop.f32.mrf.mxu1 }
 0x291   : > { %1372 = vst [vmem:[%s2532_s22 + $0x18] sm:$0xff] %v1306_v35  ;;  %v1567_v37 = vadd.f32 %v1566_v2, %v1565_v24 }
 0x292   : > { %v1568_v25 = vpop.f32.mrf.mxu1 }
 0x293   : > { %v1311_v38 = vadd.f32 %v1567_v37, %v2529_v63 }
 0x294   : > { %v1569_v41 = vpop.f32.mrf.mxu1 }
 0x295   : > { %1373 = vst [vmem:[%s2532_s22 + $0x20] sm:$0xff] %v1311_v38  ;;  %v1570_v3 = vadd.f32 %v1569_v41, %v1568_v25 }
 0x296   : > { %v1571_v39 = vpop.f32.mrf.mxu1 }
 0x297   : > { %v1316_v4 = vadd.f32 %v1570_v3, %v2529_v63 }
 0x298   : > { %v1572_v26 = vpop.f32.mrf.mxu1 }
 0x299   : > { %1374 = vst [vmem:[%s2532_s22 + $0x28] sm:$0xff] %v1316_v4  ;;  %v1573_v40 = vadd.f32 %v1572_v26, %v1571_v39 }
 0x29a   : > { %v1574_v42 = vpop.f32.mrf.mxu1 }
 0x29b   : > { %v1321_v5 = vadd.f32 %v1573_v40, %v2529_v63 }
 0x29c   : > { %v1575_v7 = vpop.f32.mrf.mxu1 }
 0x29d   : > { %1375 = vst [vmem:[%s2532_s22 + $0x30] sm:$0xff] %v1321_v5  ;;  %v1576_v44 = vadd.f32 %v1575_v7, %v1574_v42 }
 0x29e   : > { %v1577_v45 = vpop.f32.mrf.mxu1 }
 0x29f   : > { %v1326_v46 = vadd.f32 %v1576_v44, %v2529_v63 }
 0x2a0   : > { %v1578_v8 = vpop.f32.mrf.mxu1 }
 0x2a1   : > { %1376 = vst [vmem:[%s2532_s22 + $0x38] sm:$0xff] %v1326_v46  ;;  %v1579_v47 = vadd.f32 %v1578_v8, %v1577_v45 }
 0x2a2   : > { %v1580_v48 = vpop.f32.mrf.mxu1 }
 0x2a3   : > { %v1331_v9 = vadd.f32 %v1579_v47, %v2529_v63 }
 0x2a4   : > { %v1581_v10 = vpop.f32.mrf.mxu1 }
 0x2a5   : > { %1377 = vst [vmem:[%s2532_s22 + $0x40] sm:$0xff] %v1331_v9  ;;  %v1582_v49 = vadd.f32 %v1581_v10, %v1580_v48 }
 0x2a6   : > { %v1583_v33 = vpop.f32.mrf.mxu1 }
 0x2a7   : > { %v1336_v30 = vadd.f32 %v1582_v49, %v2529_v63 }
 0x2a8   : > { %v1584_v36 = vpop.f32.mrf.mxu1 }
 0x2a9   : > { %1378 = vst [vmem:[%s2532_s22 + $0x48] sm:$0xff] %v1336_v30  ;;  %v1585_v11 = vadd.f32 %v1584_v36, %v1583_v33 }
 0x2aa   : > { %v1586_v50 = vpop.f32.mrf.mxu1 }
 0x2ab   : > { %v1341_v51 = vadd.f32 %v1585_v11, %v2529_v63 }
 0x2ac   : > { %v1587_v52 = vpop.f32.mrf.mxu1 }
 0x2ad   : > { %1379 = vst [vmem:[%s2532_s22 + $0x50] sm:$0xff] %v1341_v51  ;;  %v1588_v12 = vadd.f32 %v1587_v52, %v1586_v50 }
 0x2ae   : > { %v1589_v53 = vpop.f32.mrf.mxu1 }
 0x2af   : > { %v1346_v54 = vadd.f32 %v1588_v12, %v2529_v63 }
 0x2b0   : > { %v1590_v13 = vpop.f32.mrf.mxu1 }
 0x2b1   : > { %1380 = vst [vmem:[%s2532_s22 + $0x58] sm:$0xff] %v1346_v54  ;;  %v1591_v14 = vadd.f32 %v1590_v13, %v1589_v53 }
 0x2b2   : > { %v1592_v55 = vpop.f32.mrf.mxu1 }
 0x2b3   : > { %v1351_v15 = vadd.f32 %v1591_v14, %v2529_v63 }
 0x2b4   : > { %v1593_v56 = vpop.f32.mrf.mxu1 }
 0x2b5   : > { %1381 = vst [vmem:[%s2532_s22 + $0x60] sm:$0xff] %v1351_v15  ;;  %v1594_v57 = vadd.f32 %v1593_v56, %v1592_v55 }
 0x2b6   : > { %v1595_v58 = vpop.f32.mrf.mxu1 }
 0x2b7   : > { %v1356_v16 = vadd.f32 %v1594_v57, %v2529_v63 }
 0x2b8   : > { %v1596_v59 = vpop.f32.mrf.mxu1 }
 0x2b9   : > { %1382 = vst [vmem:[%s2532_s22 + $0x68] sm:$0xff] %v1356_v16  ;;  %v1597_v60 = vadd.f32 %v1596_v59, %v1595_v58 }
 0x2ba   : > { %v1598_v17 = vpop.f32.mrf.mxu1 }
 0x2bb   : > { %v1361_v18 = vadd.f32 %v1597_v60, %v2529_v63 }
 0x2bc   : > { %v1599_v61 = vpop.f32.mrf.mxu1 }
 0x2bd   : > { %1383 = vst [vmem:[%s2532_s22 + $0x70] sm:$0xff] %v1361_v18  ;;  %v1600_v19 = vadd.f32 %v1599_v61, %v1598_v17 }
 0x2bf   : > { %v1366_v62 = vadd.f32 %v1600_v19, %v2529_v63 }
 0x2c1   : > { %1384 = vst [vmem:[%s2532_s22 + $0x78] sm:$0xff] %v1366_v62 }
 0x2c2   : > { %1688 = shalt.err (!%p1685_p3)
}
 0x2c3   : > { %s1689_s24 = scalar_lea.hbm %s2568_s27, 2048  ;;  %s1693_s26 = scalar_lea.hbm %s2625_s9, 8192 }
 0x2c4   : > { %p1690_p4 = scmp.ne.s32.totalorder %s2568_s27, %s1689_s24  ;;  %p1694_p9 = scmp.lt.s32.totalorder %s2568_s27, %s2625_s9 }
 0x2c5   : > { %p1695_p10 = scmp.lt.s32.totalorder %s1693_s26, %s1689_s24 }
 0x2c6   : > { %p1691_p7 = pnand %p1690_p4, %p1829_p5 }
 0x2c7   : > { %p1696_p11 = por %p1695_p10, %p1694_p9 }
 0x2c8   : > { %p1692_p8 = pneg %p1691_p7 }
 0x2ca   : > { %p1697_p12 = pnand %p1696_p11, %p1692_p8 }
 0x2cc   : > { %1700 = shalt.err (!%p1697_p12)
}
 0x2cd   : > { %s1739_s13 = smov 128   ;;  %s1740_s23 = smov 8  }
 0x2ce   : > { %1633 = dma.vmem_to_hbm [thread:$0]  (%p1829_p5), %s2570_s16, 2048, %s2568_s27, %s2576_s21, %s1739_s13, %s1739_s13, %s1740_s23  }
 0x2cf PF: > { %p1639_p13 = scmp.ge.s32.totalorder %s1735_s12, 2  ;;  %s1414_s25 = sand.u32 1, %s1723_s30  }
 0x2d0   : > { %s1415_s28 = scalar_lea.sflag [#allocation3], %s1414_s25 }
 0x2d1   : > { %p1636_p0 = pnand %p1639_p13, %p1833_p6 }
 0x2d3   : > { %p1637_p1 = pneg %p1636_p0 }
 0x2d5   : > { %1718 = dma.done.wait (%p1637_p1), %s1415_s28, 2048  }
 0x2d6   : > { %1720 = vsyncadd (%p1637_p1), %s1415_s28, 4294965248  ;;  %p19_p2 = scmp.ge.s32.totalorder %s1816_s15, 6   ;;  %s2630_s30 = smov %s1727_s10 }
 0x2d7   : > { %s2631_s10 = smov %s1731_s11  ;;  %s2632_s11 = smov %s1827_s18 }
 0x2d8   : > { %s2633_s12 = smov %s1816_s15  ;;  %21 = sbr.rel (!%p19_p2) target bundleno = 3 (0x3), region = 94 }
 0x2dd   :  { %1420 = vsyncpa [#allocation3], 1 }
 0x2de   :  { %1422 = vsyncpa [#allocation3 + $0x1], 1 }

</bundles_post_ra>
